<compile_context>
chip_gen: v7x
topology: tpu7x:2x2x1
jax: 0.10.0
libtpu: 0.0.40
codegen_flags: <defaults>
</compile_context>

<pallas_src>
import functools

import jax
import jax.numpy as jnp
from jax.experimental import pallas as pl
from jax.experimental.pallas import tpu as pltpu


# ---------------------------------------------------------------------------
# Pallas kernel: one (batch, time-tile) block per grid step.
# ---------------------------------------------------------------------------
def _wavenet_block_kernel(xl_ref, xc_ref, xr_ref, aux_ref,
                          w_conv_ref, w_aux_ref, b_in_ref, w_rs_ref, b_rs_ref,
                          res_ref, skip_ref, *, C, K, dil, P, Tt, Th, T):
    # xl_ref / xr_ref: (1, C, Th) halo blocks left/right of the tile
    # xc_ref         : (1, C, Tt) current tile of the *unpadded* input
    # aux_ref        : (1, A, Tt)
    # w_conv_ref     : (K, 2C, C) bf16 conv taps; w_aux_ref: (2C, A) bf16
    # b_in_ref       : (2C, 1) f32; w_rs_ref: (2C, C) bf16 [res; skip]; b_rs_ref: (2C,1) f32
    t = pl.program_id(1)
    Tw = Tt + 2 * Th

    # Conv window [left halo | tile | right halo] along lanes.
    win = jnp.concatenate([xl_ref[0], xc_ref[0], xr_ref[0]], axis=-1)   # [C, Tw]

    # Zero-fill every window column outside the real sequence [0, T).  This
    # implements the conv's zero 'same' padding at both sequence edges AND
    # masks the unspecified lanes of partial / clamped edge blocks.
    col = t * Tt - Th + jax.lax.broadcasted_iota(jnp.int32, (1, Tw), 1)
    valid = (col >= 0) & (col < T)
    win = jnp.where(valid, win, jnp.zeros((), win.dtype)).astype(jnp.bfloat16)

    # Dilated conv = K accumulating MXU dots on lane-shifted views of `win`,
    # plus the aux 1x1 projection (bf16 operands, f32 accumulation).
    acc = jnp.dot(w_aux_ref[...], aux_ref[0].astype(jnp.bfloat16),
                  preferred_element_type=jnp.float32)
    for k in range(K):
        off = Th - P + k * dil                          # static lane offset
        acc = acc + jnp.dot(w_conv_ref[k], win[:, off:off + Tt],
                            preferred_element_type=jnp.float32)
    acc = acc + b_in_ref[...]                           # [2C, Tt] f32

    # Gated activation; split order matches torch.chunk(2, dim=1):
    # first C output channels -> sigmoid gate, last C -> tanh context.
    gate = acc[:C, :]
    context = acc[C:, :]
    # sigmoid(x) == 0.5 * (tanh(0.5*x) + 1): a single EUP op.
    sig = 0.5 * (jnp.tanh(0.5 * gate) + 1.0)
    x = sig * jnp.tanh(context)                         # [C, Tt] f32

    # Fused proj_res / proj_skip: one [2C, C] @ [C, Tt] dot, then split rows.
    rs = jnp.dot(w_rs_ref[...], x.astype(jnp.bfloat16),
                 preferred_element_type=jnp.float32) + b_rs_ref[...]
    res_ref[0] = ((x + rs[:C, :]) * (2.0 ** -0.5)).astype(res_ref.dtype)
    skip_ref[0] = rs[C:, :].astype(skip_ref.dtype)


# ---------------------------------------------------------------------------
# Wrapper
# ---------------------------------------------------------------------------
def wavenet_block(inputs, aux, params, *, kernels, dilations,
                  time_tile=2048, io_dtype=jnp.bfloat16):
    """inputs: [B, C, T], aux: [B, A, T] -> (res [B,C,T], skip [B,C,T]) in io_dtype."""
    B, C, T = inputs.shape
    A = aux.shape[1]
    C2 = 2 * C

    # PyTorch 'same' padding only holds when (kernels-1)*dilations is even.
    assert (kernels - 1) * dilations % 2 == 0, "padding would misalign vs PyTorch"
    P = (kernels - 1) * dilations // 2

    # Halo block Th: 128-lane multiple covering the conv receptive radius P.
    Th = max(128, ((P + 127) // 128) * 128)
    # Time tile: multiple of Th (so halo block-index arithmetic is exact).
    Tt = ((min(time_tile, max(T, 1)) + Th - 1) // Th) * Th
    ratio = Tt // Th
    NT = pl.cdiv(T, Tt)                 # time tiles (last one may be partial)
    NBh = pl.cdiv(T, Th)                # Th-blocks along time (halo clamping)

    # bf16 I/O (callers may pass bf16 directly to skip this one-time cast).
    x = inputs.astype(io_dtype)
    aux_c = aux.astype(io_dtype)

    # Weights bf16 (MXU-native), biases f32.
    w_conv = params["w_conv"].astype(jnp.bfloat16)                   # [K, 2C, C]
    w_aux = params["w_aux"].astype(jnp.bfloat16)                     # [2C, A]
    b_in = params["b_conv"].astype(jnp.float32)                      # [2C, 1]
    w_rs = jnp.concatenate([params["w_res"], params["w_skip"]],
                           axis=0).astype(jnp.bfloat16)              # [2C, C]
    b_rs = jnp.concatenate([params["b_res"], params["b_skip"]],
                           axis=0).astype(jnp.float32)               # [2C, 1]

    kernel = functools.partial(_wavenet_block_kernel, C=C, K=kernels,
                               dil=dilations, P=P, Tt=Tt, Th=Th, T=T)

    # Halo index maps clamp at the array boundaries; out-of-range columns are
    # zero-masked in the kernel, so the clamped data never leaks into outputs.
    left_map = lambda b, t: (b, 0, jnp.maximum(t * ratio - 1, 0))
    cur_map = lambda b, t: (b, 0, t)
    right_map = lambda b, t: (b, 0, jnp.minimum((t + 1) * ratio, NBh - 1))
    aux_map = lambda b, t: (b, 0, t)

    out_shape = (jax.ShapeDtypeStruct((B, C, T), io_dtype),
                 jax.ShapeDtypeStruct((B, C, T), io_dtype))

    # Generation-safe VMEM cap from the real per-step footprint (32-48 MiB).
    itemsize = jnp.dtype(io_dtype).itemsize
    io_bytes = (C * (Tt + 2 * Th) + A * Tt + 2 * C * Tt) * itemsize
    scratch_bytes = 12 * C2 * Tt * 4
    vmem_limit = int(min(48 * 2 ** 20, max(32 * 2 ** 20, 3 * io_bytes + scratch_bytes)))

    res, skip = pl.pallas_call(
        kernel,
        out_shape=out_shape,
        grid=(B, NT),
        in_specs=[
            pl.BlockSpec((1, C, Th), left_map),       # left halo
            pl.BlockSpec((1, C, Tt), cur_map),        # current input tile
            pl.BlockSpec((1, C, Th), right_map),      # right halo
            pl.BlockSpec((1, A, Tt), aux_map),        # aux features
            # weights / biases: constant index maps -> fetched once
            pl.BlockSpec((kernels, C2, C), lambda b, t: (0, 0, 0)),
            pl.BlockSpec((C2, A), lambda b, t: (0, 0)),
            pl.BlockSpec((C2, 1), lambda b, t: (0, 0)),
            pl.BlockSpec((C2, C), lambda b, t: (0, 0)),
            pl.BlockSpec((C2, 1), lambda b, t: (0, 0)),
        ],
        out_specs=(pl.BlockSpec((1, C, Tt), lambda b, t: (b, 0, t)),
                   pl.BlockSpec((1, C, Tt), lambda b, t: (b, 0, t))),
        compiler_params=pltpu.CompilerParams(
            dimension_semantics=("parallel", "parallel"),
            vmem_limit_bytes=vmem_limit),
    )(x, x, x, aux_c, w_conv, w_aux, b_in, w_rs, b_rs)

    return res, skip


# ---------------------------------------------------------------------------
# Deterministic parameter setup (weight_norm folded into effective weights)
# ---------------------------------------------------------------------------
def _weight_norm(v, g):
    # nn.utils.weight_norm default: norm over all dims except dim 0.
    norm = jnp.sqrt(jnp.sum(v * v, axis=tuple(range(1, v.ndim)), keepdims=True))
    return g * v / norm


def init_params(key, channels, aux, kernels):
    ks = jax.random.split(key, 12)
    C2 = channels * 2

    v_conv = 0.3 * jax.random.normal(ks[0], (C2, channels, kernels), jnp.float32)
    g_conv = 1.0 + 0.1 * jax.random.normal(ks[1], (C2, 1, 1), jnp.float32)
    w_conv = _weight_norm(v_conv, g_conv)                    # [2C, C, K]
    b_conv = 0.1 * jax.random.normal(ks[2], (C2,), jnp.float32)

    v_aux = 0.3 * jax.random.normal(ks[3], (C2, aux, 1), jnp.float32)
    g_aux = 1.0 + 0.1 * jax.random.normal(ks[4], (C2, 1, 1), jnp.float32)
    w_aux = _weight_norm(v_aux, g_aux)[:, :, 0]              # [2C, A] (bias=False)

    v_res = 0.3 * jax.random.normal(ks[5], (channels, channels, 1), jnp.float32)
    g_res = 1.0 + 0.1 * jax.random.normal(ks[6], (channels, 1, 1), jnp.float32)
    w_res = _weight_norm(v_res, g_res)[:, :, 0]              # [C, C]
    b_res = 0.1 * jax.random.normal(ks[7], (channels,), jnp.float32)

    v_skip = 0.3 * jax.random.normal(ks[8], (channels, channels, 1), jnp.float32)
    g_skip = 1.0 + 0.1 * jax.random.normal(ks[9], (channels, 1, 1), jnp.float32)
    w_skip = _weight_norm(v_skip, g_skip)[:, :, 0]           # [C, C]
    b_skip = 0.1 * jax.random.normal(ks[10], (channels,), jnp.float32)

    return {
        "w_conv": jnp.transpose(w_conv, (2, 0, 1)),          # [K, 2C, C]
        "b_conv": b_conv.reshape(C2, 1),
        "w_aux": w_aux,
        "w_res": w_res,
        "b_res": b_res.reshape(channels, 1),
        "w_skip": w_skip,
        "b_skip": b_skip.reshape(channels, 1),
    }


# ---------------------------------------------------------------------------
# Pure-JAX f32 reference (same math as the PyTorch module) for correctness.
# ---------------------------------------------------------------------------
def reference(inputs, aux, params, *, kernels, dilations):
    B, C, T = inputs.shape
    P = (kernels - 1) * dilations // 2
    xpad = jnp.pad(inputs, ((0, 0), (0, 0), (P, P)))
    acc = params["b_conv"][None, :, :]                       # [1, 2C, 1]
    acc = jnp.broadcast_to(acc, (B, 2 * C, T)).astype(jnp.float32)
    for k in range(kernels):
        x_k = xpad[:, :, k * dilations: k * dilations + T]
        acc = acc + jnp.einsum("oc,bct->bot", params["w_conv"][k], x_k)
    acc = acc + jnp.einsum("oa,bat->bot", params["w_aux"], aux)
    gate, context = acc[:, :C], acc[:, C:]
    x = jax.nn.sigmoid(gate) * jnp.tanh(context)
    proj_res = jnp.einsum("oc,bct->bot", params["w_res"], x) + params["b_res"][None]
    res = (x + proj_res) * (2.0 ** -0.5)
    skip = jnp.einsum("oc,bct->bot", params["w_skip"], x) + params["b_skip"][None]
    return res, skip


if __name__ == "__main__":
    B, C, A, T = 2, 4, 6, 300
    KERNELS, DILATIONS = 3, 2

    key = jax.random.PRNGKey(0)
    k_in, k_aux, k_par = jax.random.split(key, 3)
    inputs = jax.random.normal(k_in, (B, C, T), jnp.float32)
    aux = jax.random.normal(k_aux, (B, A, T), jnp.float32)
    params = init_params(k_par, C, A, KERNELS)

    res_ref, skip_ref = reference(inputs, aux, params,
                                  kernels=KERNELS, dilations=DILATIONS)

    # Multi-tile config: exercises halo stitching, edge masking, partial tiles.
    res, skip = wavenet_block(inputs, aux, params, kernels=KERNELS,
                              dilations=DILATIONS, time_tile=128)
    jax.block_until_ready((res, skip))
    assert res.shape == (B, C, T) and skip.shape == (B, C, T)
    # bf16 I/O + bf16 matmul operands vs f32 reference -> loose tolerance.
    assert jnp.allclose(res.astype(jnp.float32), res_ref, atol=5e-2, rtol=5e-2)
    assert jnp.allclose(skip.astype(jnp.float32), skip_ref, atol=5e-2, rtol=5e-2)

    # Default (large-tile) config: single tile covering the whole sequence.
    res2, skip2 = wavenet_block(inputs, aux, params, kernels=KERNELS,
                                dilations=DILATIONS)
    jax.block_until_ready((res2, skip2))
    assert jnp.allclose(res2.astype(jnp.float32), res_ref, atol=5e-2, rtol=5e-2)
    assert jnp.allclose(skip2.astype(jnp.float32), skip_ref, atol=5e-2, rtol=5e-2)

    print("KERNEL_OK")
</pallas_src>

<mosaic_0001>
module attributes {stable_mosaic.version = 11 : i64} {
  func.func @_wavenet_block_kernel(%arg0: i32, %arg1: i32, %arg2: memref<1x4x128xbf16, #tpu.memory_space<vmem>>, %arg3: memref<1x4x128xbf16, #tpu.memory_space<vmem>>, %arg4: memref<1x4x128xbf16, #tpu.memory_space<vmem>>, %arg5: memref<1x6x128xbf16, #tpu.memory_space<vmem>>, %arg6: memref<3x8x4xbf16, #tpu.memory_space<vmem>>, %arg7: memref<8x6xbf16, #tpu.memory_space<vmem>>, %arg8: memref<8x1xf32, #tpu.memory_space<vmem>>, %arg9: memref<8x4xbf16, #tpu.memory_space<vmem>>, %arg10: memref<8x1xf32, #tpu.memory_space<vmem>>, %arg11: memref<1x4x128xbf16, #tpu.memory_space<vmem>>, %arg12: memref<1x4x128xbf16, #tpu.memory_space<vmem>>) attributes {dimension_semantics = [#tpu.dimension_semantics<parallel>, #tpu.dimension_semantics<parallel>], iteration_bounds = array<i64: 2, 3>, scalar_prefetch = 0 : i64, scratch_operands = 0 : i64, tpu.core_type = #tpu.core_type<tc>, window_params = [{transform_indices = @transform_0, window_bounds = array<i64: 1, 4, 128>}, {transform_indices = @transform_1, window_bounds = array<i64: 1, 4, 128>}, {transform_indices = @transform_2, window_bounds = array<i64: 1, 4, 128>}, {transform_indices = @transform_3, window_bounds = array<i64: 1, 6, 128>}, {pipeline_mode = #tpu.pipeline_mode<synchronous>, transform_indices = @transform_4, window_bounds = array<i64: 3, 8, 4>}, {pipeline_mode = #tpu.pipeline_mode<synchronous>, transform_indices = @transform_5, window_bounds = array<i64: 8, 6>}, {pipeline_mode = #tpu.pipeline_mode<synchronous>, transform_indices = @transform_6, window_bounds = array<i64: 8, 1>}, {pipeline_mode = #tpu.pipeline_mode<synchronous>, transform_indices = @transform_7, window_bounds = array<i64: 8, 4>}, {pipeline_mode = #tpu.pipeline_mode<synchronous>, transform_indices = @transform_8, window_bounds = array<i64: 8, 1>}, {transform_indices = @transform_9, window_bounds = array<i64: 1, 4, 128>}, {transform_indices = @transform_10, window_bounds = array<i64: 1, 4, 128>}]} {
    %c0 = arith.constant 0 : index
    %c0_0 = arith.constant 0 : index
    %c0_1 = arith.constant 0 : index
    %0 = vector.load %arg2[%c0, %c0_0, %c0_1] : memref<1x4x128xbf16, #tpu.memory_space<vmem>>, vector<1x4x128xbf16>
    %1 = vector.shape_cast %0 : vector<1x4x128xbf16> to vector<4x128xbf16>
    %c0_2 = arith.constant 0 : index
    %c0_3 = arith.constant 0 : index
    %c0_4 = arith.constant 0 : index
    %2 = vector.load %arg3[%c0_2, %c0_3, %c0_4] : memref<1x4x128xbf16, #tpu.memory_space<vmem>>, vector<1x4x128xbf16>
    %3 = vector.shape_cast %2 : vector<1x4x128xbf16> to vector<4x128xbf16>
    %c0_5 = arith.constant 0 : index
    %c0_6 = arith.constant 0 : index
    %c0_7 = arith.constant 0 : index
    %4 = vector.load %arg4[%c0_5, %c0_6, %c0_7] : memref<1x4x128xbf16, #tpu.memory_space<vmem>>, vector<1x4x128xbf16>
    %5 = vector.shape_cast %4 : vector<1x4x128xbf16> to vector<4x128xbf16>
    %6 = tpu.concatenate %1, %3, %5 in 1 : vector<4x128xbf16>, vector<4x128xbf16>, vector<4x128xbf16> -> vector<4x384xbf16>
    %c128_i32 = arith.constant 128 : i32
    %7 = arith.muli %arg1, %c128_i32 : i32
    %c128_i32_8 = arith.constant 128 : i32
    %8 = arith.subi %7, %c128_i32_8 : i32
    %9 = tpu.iota {dimensions = array<i32: 1>} : vector<1x384xi32>
    %10 = vector.broadcast %8 : i32 to vector<1x384xi32>
    %11 = arith.addi %10, %9 : vector<1x384xi32>
    %c0_i32 = arith.constant 0 : i32
    %12 = vector.broadcast %c0_i32 : i32 to vector<1x384xi32>
    %13 = arith.cmpi sge, %11, %12 : vector<1x384xi32>
    %c300_i32 = arith.constant 300 : i32
    %14 = vector.broadcast %c300_i32 : i32 to vector<1x384xi32>
    %15 = arith.cmpi slt, %11, %14 : vector<1x384xi32>
    %16 = arith.andi %13, %15 : vector<1x384xi1>
    %cst = arith.constant 0.000000e+00 : bf16
    %17 = vector.shape_cast %16 : vector<1x384xi1> to vector<1x384xi1>
    %18 = vector.broadcast %17 : vector<1x384xi1> to vector<4x384xi1>
    %19 = vector.broadcast %cst : bf16 to vector<4x384xbf16>
    %20 = arith.select %18, %6, %19 : vector<4x384xi1>, vector<4x384xbf16>
    %c0_9 = arith.constant 0 : index
    %c0_10 = arith.constant 0 : index
    %21 = vector.load %arg7[%c0_9, %c0_10] : memref<8x6xbf16, #tpu.memory_space<vmem>>, vector<8x6xbf16>
    %c0_11 = arith.constant 0 : index
    %c0_12 = arith.constant 0 : index
    %c0_13 = arith.constant 0 : index
    %22 = vector.load %arg5[%c0_11, %c0_12, %c0_13] : memref<1x6x128xbf16, #tpu.memory_space<vmem>>, vector<1x6x128xbf16>
    %23 = vector.shape_cast %22 : vector<1x6x128xbf16> to vector<6x128xbf16>
    %cst_14 = arith.constant dense<0.000000e+00> : vector<8x128xf32>
    %24 = tpu.matmul %21, %23, %cst_14 {dimension_numbers = #tpu.dot_dimension_numbers<[1], [0], [0], [1], [0, 0, 1, 1], [], []>} : vector<8x6xbf16>, vector<6x128xbf16>, vector<8x128xf32> -> vector<8x128xf32>
    %c0_15 = arith.constant 0 : index
    %c0_16 = arith.constant 0 : index
    %c0_17 = arith.constant 0 : index
    %25 = vector.load %arg6[%c0_15, %c0_16, %c0_17] : memref<3x8x4xbf16, #tpu.memory_space<vmem>>, vector<1x8x4xbf16>
    %26 = vector.shape_cast %25 : vector<1x8x4xbf16> to vector<8x4xbf16>
    %27 = vector.extract_strided_slice %20 {offsets = [0, 126], sizes = [4, 128], strides = [1, 1]} : vector<4x384xbf16> to vector<4x128xbf16>
    %cst_18 = arith.constant dense<0.000000e+00> : vector<8x128xf32>
    %28 = tpu.matmul %26, %27, %cst_18 {dimension_numbers = #tpu.dot_dimension_numbers<[1], [0], [0], [1], [0, 0, 1, 1], [], []>} : vector<8x4xbf16>, vector<4x128xbf16>, vector<8x128xf32> -> vector<8x128xf32>
    %29 = arith.addf %24, %28 : vector<8x128xf32>
    %c1 = arith.constant 1 : index
    %c0_19 = arith.constant 0 : index
    %c0_20 = arith.constant 0 : index
    %30 = vector.load %arg6[%c1, %c0_19, %c0_20] : memref<3x8x4xbf16, #tpu.memory_space<vmem>>, vector<1x8x4xbf16>
    %31 = vector.shape_cast %30 : vector<1x8x4xbf16> to vector<8x4xbf16>
    %32 = vector.extract_strided_slice %20 {offsets = [0, 128], sizes = [4, 128], strides = [1, 1]} : vector<4x384xbf16> to vector<4x128xbf16>
    %cst_21 = arith.constant dense<0.000000e+00> : vector<8x128xf32>
    %33 = tpu.matmul %31, %32, %cst_21 {dimension_numbers = #tpu.dot_dimension_numbers<[1], [0], [0], [1], [0, 0, 1, 1], [], []>} : vector<8x4xbf16>, vector<4x128xbf16>, vector<8x128xf32> -> vector<8x128xf32>
    %34 = arith.addf %29, %33 : vector<8x128xf32>
    %c2 = arith.constant 2 : index
    %c0_22 = arith.constant 0 : index
    %c0_23 = arith.constant 0 : index
    %35 = vector.load %arg6[%c2, %c0_22, %c0_23] : memref<3x8x4xbf16, #tpu.memory_space<vmem>>, vector<1x8x4xbf16>
    %36 = vector.shape_cast %35 : vector<1x8x4xbf16> to vector<8x4xbf16>
    %37 = vector.extract_strided_slice %20 {offsets = [0, 130], sizes = [4, 128], strides = [1, 1]} : vector<4x384xbf16> to vector<4x128xbf16>
    %cst_24 = arith.constant dense<0.000000e+00> : vector<8x128xf32>
    %38 = tpu.matmul %36, %37, %cst_24 {dimension_numbers = #tpu.dot_dimension_numbers<[1], [0], [0], [1], [0, 0, 1, 1], [], []>} : vector<8x4xbf16>, vector<4x128xbf16>, vector<8x128xf32> -> vector<8x128xf32>
    %39 = arith.addf %34, %38 : vector<8x128xf32>
    %c0_25 = arith.constant 0 : index
    %c0_26 = arith.constant 0 : index
    %40 = vector.load %arg8[%c0_25, %c0_26] : memref<8x1xf32, #tpu.memory_space<vmem>>, vector<8x1xf32>
    %41 = vector.broadcast %40 : vector<8x1xf32> to vector<8x128xf32>
    %42 = arith.addf %39, %41 : vector<8x128xf32>
    %43 = vector.extract_strided_slice %42 {offsets = [0, 0], sizes = [4, 128], strides = [1, 1]} : vector<8x128xf32> to vector<4x128xf32>
    %44 = vector.extract_strided_slice %42 {offsets = [4, 0], sizes = [4, 128], strides = [1, 1]} : vector<8x128xf32> to vector<4x128xf32>
    %cst_27 = arith.constant 5.000000e-01 : f32
    %45 = vector.broadcast %cst_27 : f32 to vector<4x128xf32>
    %46 = arith.mulf %45, %43 : vector<4x128xf32>
    %47 = math.tanh %46 : vector<4x128xf32>
    %cst_28 = arith.constant 1.000000e+00 : f32
    %48 = vector.broadcast %cst_28 : f32 to vector<4x128xf32>
    %49 = arith.addf %47, %48 : vector<4x128xf32>
    %cst_29 = arith.constant 5.000000e-01 : f32
    %50 = vector.broadcast %cst_29 : f32 to vector<4x128xf32>
    %51 = arith.mulf %50, %49 : vector<4x128xf32>
    %52 = math.tanh %44 : vector<4x128xf32>
    %53 = arith.mulf %51, %52 : vector<4x128xf32>
    %c0_30 = arith.constant 0 : index
    %c0_31 = arith.constant 0 : index
    %54 = vector.load %arg9[%c0_30, %c0_31] : memref<8x4xbf16, #tpu.memory_space<vmem>>, vector<8x4xbf16>
    %55 = arith.truncf %53 : vector<4x128xf32> to vector<4x128xbf16>
    %cst_32 = arith.constant dense<0.000000e+00> : vector<8x128xf32>
    %56 = tpu.matmul %54, %55, %cst_32 {dimension_numbers = #tpu.dot_dimension_numbers<[1], [0], [0], [1], [0, 0, 1, 1], [], []>} : vector<8x4xbf16>, vector<4x128xbf16>, vector<8x128xf32> -> vector<8x128xf32>
    %c0_33 = arith.constant 0 : index
    %c0_34 = arith.constant 0 : index
    %57 = vector.load %arg10[%c0_33, %c0_34] : memref<8x1xf32, #tpu.memory_space<vmem>>, vector<8x1xf32>
    %58 = vector.broadcast %57 : vector<8x1xf32> to vector<8x128xf32>
    %59 = arith.addf %56, %58 : vector<8x128xf32>
    %60 = vector.extract_strided_slice %59 {offsets = [0, 0], sizes = [4, 128], strides = [1, 1]} : vector<8x128xf32> to vector<4x128xf32>
    %61 = arith.addf %53, %60 : vector<4x128xf32>
    %cst_35 = arith.constant 0.707106769 : f32
    %62 = vector.broadcast %cst_35 : f32 to vector<4x128xf32>
    %63 = arith.mulf %61, %62 : vector<4x128xf32>
    %64 = arith.truncf %63 : vector<4x128xf32> to vector<4x128xbf16>
    %c0_36 = arith.constant 0 : index
    %c0_37 = arith.constant 0 : index
    %c0_38 = arith.constant 0 : index
    %65 = vector.load %arg11[%c0_36, %c0_37, %c0_38] : memref<1x4x128xbf16, #tpu.memory_space<vmem>>, vector<1x4x128xbf16>
    %66 = vector.shape_cast %65 : vector<1x4x128xbf16> to vector<4x128xbf16>
    %67 = vector.shape_cast %64 : vector<4x128xbf16> to vector<1x4x128xbf16>
    tpu.vector_store %arg11[%c0_36, %c0_37, %c0_38], %67 {strides = array<i32>} : memref<1x4x128xbf16, #tpu.memory_space<vmem>>, vector<1x4x128xbf16>,
    %68 = vector.extract_strided_slice %59 {offsets = [4, 0], sizes = [4, 128], strides = [1, 1]} : vector<8x128xf32> to vector<4x128xf32>
    %69 = arith.truncf %68 : vector<4x128xf32> to vector<4x128xbf16>
    %c0_39 = arith.constant 0 : index
    %c0_40 = arith.constant 0 : index
    %c0_41 = arith.constant 0 : index
    %70 = vector.load %arg12[%c0_39, %c0_40, %c0_41] : memref<1x4x128xbf16, #tpu.memory_space<vmem>>, vector<1x4x128xbf16>
    %71 = vector.shape_cast %70 : vector<1x4x128xbf16> to vector<4x128xbf16>
    %72 = vector.shape_cast %69 : vector<4x128xbf16> to vector<1x4x128xbf16>
    tpu.vector_store %arg12[%c0_39, %c0_40, %c0_41], %72 {strides = array<i32>} : memref<1x4x128xbf16, #tpu.memory_space<vmem>>, vector<1x4x128xbf16>,
    return
  }
  func.func @transform_0(%arg0: i32, %arg1: i32) -> (i32, i32, i32) {
    %c1_i32 = arith.constant 1 : i32
    %0 = arith.muli %arg1, %c1_i32 : i32
    %c1_i32_0 = arith.constant 1 : i32
    %1 = arith.subi %0, %c1_i32_0 : i32
    %c0_i32 = arith.constant 0 : i32
    %2 = arith.maxsi %1, %c0_i32 : i32
    %c0_i32_1 = arith.constant 0 : i32
    %c0_i32_2 = arith.constant 0 : i32
    return %arg0, %c0_i32_1, %2 : i32, i32, i32
  }
  func.func @transform_1(%arg0: i32, %arg1: i32) -> (i32, i32, i32) {
    %c0_i32 = arith.constant 0 : i32
    %c0_i32_0 = arith.constant 0 : i32
    return %arg0, %c0_i32, %arg1 : i32, i32, i32
  }
  func.func @transform_2(%arg0: i32, %arg1: i32) -> (i32, i32, i32) {
    %c1_i32 = arith.constant 1 : i32
    %0 = arith.addi %arg1, %c1_i32 : i32
    %c1_i32_0 = arith.constant 1 : i32
    %1 = arith.muli %0, %c1_i32_0 : i32
    %c2_i32 = arith.constant 2 : i32
    %2 = arith.minsi %1, %c2_i32 : i32
    %c0_i32 = arith.constant 0 : i32
    %c0_i32_1 = arith.constant 0 : i32
    return %arg0, %c0_i32, %2 : i32, i32, i32
  }
  func.func @transform_3(%arg0: i32, %arg1: i32) -> (i32, i32, i32) {
    %c0_i32 = arith.constant 0 : i32
    %c0_i32_0 = arith.constant 0 : i32
    return %arg0, %c0_i32, %arg1 : i32, i32, i32
  }
  func.func @transform_4(%arg0: i32, %arg1: i32) -> (i32, i32, i32) {
    %c0_i32 = arith.constant 0 : i32
    %c0_i32_0 = arith.constant 0 : i32
    %c0_i32_1 = arith.constant 0 : i32
    %c0_i32_2 = arith.constant 0 : i32
    return %c0_i32, %c0_i32_0, %c0_i32_1 : i32, i32, i32
  }
  func.func @transform_5(%arg0: i32, %arg1: i32) -> (i32, i32) {
    %c0_i32 = arith.constant 0 : i32
    %c0_i32_0 = arith.constant 0 : i32
    %c0_i32_1 = arith.constant 0 : i32
    return %c0_i32, %c0_i32_0 : i32, i32
  }
  func.func @transform_6(%arg0: i32, %arg1: i32) -> (i32, i32) {
    %c0_i32 = arith.constant 0 : i32
    %c0_i32_0 = arith.constant 0 : i32
    %c0_i32_1 = arith.constant 0 : i32
    return %c0_i32, %c0_i32_0 : i32, i32
  }
  func.func @transform_7(%arg0: i32, %arg1: i32) -> (i32, i32) {
    %c0_i32 = arith.constant 0 : i32
    %c0_i32_0 = arith.constant 0 : i32
    %c0_i32_1 = arith.constant 0 : i32
    return %c0_i32, %c0_i32_0 : i32, i32
  }
  func.func @transform_8(%arg0: i32, %arg1: i32) -> (i32, i32) {
    %c0_i32 = arith.constant 0 : i32
    %c0_i32_0 = arith.constant 0 : i32
    %c0_i32_1 = arith.constant 0 : i32
    return %c0_i32, %c0_i32_0 : i32, i32
  }
  func.func @transform_9(%arg0: i32, %arg1: i32) -> (i32, i32, i32) {
    %c0_i32 = arith.constant 0 : i32
    %c0_i32_0 = arith.constant 0 : i32
    return %arg0, %c0_i32, %arg1 : i32, i32, i32
  }
  func.func @transform_10(%arg0: i32, %arg1: i32) -> (i32, i32, i32) {
    %c0_i32 = arith.constant 0 : i32
    %c0_i32_0 = arith.constant 0 : i32
    return %arg0, %c0_i32, %arg1 : i32, i32, i32
  }
}

</mosaic_0001>

<bundles_post_ra>
// kernel: tpu_custom_call.1
= control target key start
LH: loop header
LB: loop body
LE: loop exit
PB: predicated region body
PF: predicated region fallthrough
CT: control target
= control target key end

     0   :  { %s1695_s0 = inlined_call_operand.vmem [shape: bf16[2,4,300], index: 0, kind: input, shape index: {}]   ;;  %s1696_s1 = inlined_call_operand.vmem [shape: bf16[2,4,300], index: 1, kind: input, shape index: {}]   ;;  %s1697_s2 = inlined_call_operand.vmem [shape: bf16[2,4,300], index: 2, kind: input, shape index: {}]   ;;  %s1698_s3 = inlined_call_operand.vmem [shape: bf16[2,6,300], index: 3, kind: input, shape index: {}]   ;;  %s1699_s4 = inlined_call_operand.vmem [shape: bf16[3,8,4], index: 4, kind: input, shape index: {}]   ;;  %s1700_s5 = inlined_call_operand.vmem [shape: bf16[8,6], index: 5, kind: input, shape index: {}]   ;;  %s1701_s6 = inlined_call_operand.vmem [shape: f32[8,1], index: 6, kind: input, shape index: {}]   ;;  %s1702_s7 = inlined_call_operand.vmem [shape: bf16[8,4], index: 7, kind: input, shape index: {}]   ;;  %s1703_s8 = inlined_call_operand.vmem [shape: f32[8,1], index: 8, kind: input, shape index: {}]   ;;  %s1704_s9 = inlined_call_operand.hbm [shape: bf16[2,4,300], index: 9, kind: output, shape index: {0}]   ;;  %s1705_s10 = inlined_call_operand.hbm [shape: bf16[2,4,300], index: 10, kind: output, shape index: {1}]  }
   0x1   :  { %1711 = sst [smem:[#allocation13_spill]] %s1695_s0 }
   0x2   :  { %16 = vsyncpa [#allocation3], 0 }
   0x3   :  { %18 = vsyncpa [#allocation3 + $0x1], 0 }
   0x4   :  { %19 = vsyncpa [#allocation5], 0 }
   0x5   :  { %21 = vsyncpa [#allocation5 + $0x1], 0  ;;  %s1445_s13 = smov 0   ;;  %s1447_s14 = smov 0  }
   0x6   :  { %s1449_s15 = smov 0   ;;  %s1451_s16 = smov 0  }
   0x7   :  { %s1453_s17 = smov 0   ;;  %s1455_s18 = smov 0  }
   0x8   :  { %s1457_s19 = smov 0   ;;  %s1459_s20 = smov 0  }
   0x9 LB: > { %1712 = sst [smem:[#allocation8_spill]] %s1372_s18  ;;  %s1084_s21 = sadd.s32 4294967295, %s1380_s20   ;;  %s1380_s20 = sphi %s1459_s20, %s27_s20   ;;  %s1376_s19 = sphi %s1457_s19, %s1726_s19   ;;  %s1372_s18 = sphi %s1455_s18, %s1725_s18   ;;  %s1368_s17 = sphi %s1453_s17, %s1724_s17   ;;  %s1364_s16 = sphi %s1451_s16, %s1723_s16   ;;  %s1360_s15 = sphi %s1449_s15, %s1729_s15   ;;  %s1356_s14 = sphi %s1447_s14, %s1728_s14   ;;  %s1352_s13 = sphi %s1445_s13, %s1727_s13  }
   0xa   : > { %1713 = sst [smem:[#allocation9_spill]] %s1376_s19  ;;  %s1085_s22 = sadd.s32 4294967294, %s1380_s20  }
   0xb   : > { %s36_s23 = sadd.s32 1, %s1372_s18  ;;  %s39_s24 = sadd.s32 1, %s1376_s19 }
   0xc   : > { %p37_p0 = scmp.ge.s32.totalorder %s36_s23, 3  ;;  %p287_p1 = scmp.ne.s32.totalorder %s1360_s15, %s1356_s14 }
   0xd   : > { %p288_p2 = scmp.eq.s32.totalorder %s1084_s21, 5  ;;  %p293_p5 = scmp.ne.s32.totalorder %s1356_s14, %s1352_s13 }
   0xe   : > { %s1731_s23 = smov (%p37_p0, %s36_s23), 0  ;;  %s1733_s24 = smov (!%p37_p0, %s39_s24), %s1376_s19 }
   0xf   : > { %1714 = sst [smem:[#allocation10_spill]] %s1731_s23  ;;  %s273_s25 = ssub.s32 %s1372_s18, %s1731_s23 }
  0x10   : > { %p1496_p3 = por %p288_p2, %p287_p1  ;;  %p41_p4 = scmp.ge.s32.totalorder %s1733_s24, 2 }
  0x11   : > { %p294_p6 = scmp.eq.s32.totalorder %s1085_s22, 5  ;;  %p1090_p7 = scmp.ge.s32.totalorder %s1380_s20, 1 }
  0x12   : > { %s1735_s24 = smov (%p41_p4, %s1733_s24), 0  ;;  %p411_p9 = scmp.lt.s32.totalorder %s1380_s20, 7 }
  0x13   : > { %1716 = sst [smem:[#allocation11_spill]] %s1735_s24  ;;  %p1505_p8 = por %p294_p6, %p293_p5 }
  0x14   : > { %s272_s28 = ssub.s32 %s1376_s19, %s1735_s24  ;;  %s277_s29 = sadd.s32 1, %s1360_s15 }
  0x15   : > { %s274_s30 = sor.u32 %s273_s25, %s272_s28  ;;  %p412_p10 = pnand %p1090_p7, %p411_p9 }
  0x16   : > { %p275_p11 = scmp.eq.s32.totalorder %s274_s30, 0  ;;  %s1093_s12 = sadd.s32 (!%p412_p10), 4294967295, %s1364_s16  ;;  %v539_v0 = vlaneseq (!%p412_p10)  ;;  %v1382_v1 = vmov (!%p412_p10), 0   ;;  %v1383_v10 = vmov (!%p412_p10), 0.0   ;;  %vm1384_vm9 = vmmov (!%p412_p10), 0   ;;  %v796_v27 = vld [vmem:[%s1701_s6] sm:$0xff] (!%p412_p10) }
  0x17   : > { %415 = sbr.rel (%p412_p10) target bundleno = 672 (0x2a0), region = 56  ;;  %p490_p12 = scmp.lt.s32.totalorder (!%p412_p10), %s1368_s17, 1  ;;  %1248 = vset.pattern.permute.xlu0 (!%p412_p10), %v1382_v1  ;;  %1249 = vset.pattern.permute.xlu1 (!%p412_p10), %v1382_v1  ;;  %vm647_vm11 = vcmask (!%p412_p10), 1042432   ;;  %v584_v24 = vld [vmem:[%s1700_s5] sm:$0xf] (!%p412_p10)  ;;  %vm643_vm15 = vcmask (!%p412_p10), 48128  }
  0x18   : > { %s1514_s11 = scalar_select %p275_p11, %s1360_s15, %s277_s29  }
  0x19   : > { %p488_p13 = scmp.gt.s32.totalorder (!%p412_p10), %s1093_s12, 0  ;;  %p1094_p0 = scmp.lt.s32.totalorder (!%p412_p10), %s1093_s12, 2  ;;  %v540_v2 = vand.u32 (!%p412_p10), 127, %v539_v0  ;;  %v1523_v6 = vshrl.u32 (!%p412_p10), %v539_v0, 7  ;;  %1139 = vmatprep.subr.bf16.mxu1 (!%p412_p10), %v1383_v10  ;;  %1133 = vmatprep.subr.bf16.mxu0 (!%p412_p10), %v1383_v10  ;;  %v586_v35 = vld [vmem:[%s1699_s4] sm:$0xf] (!%p412_p10) }
  0x1a   : > { %1718 = sst [smem:[#allocation12_spill]] %s1514_s11  ;;  %s1106_s25 = sshll.u32 (!%p412_p10), %s1364_s16, 7  ;;  %1141 = vmatprep.mubr.msk.bf16.mxu1 (!%p412_p10), %vm1384_vm9, %v1383_v10  ;;  %1135 = vmatprep.mubr.msk.bf16.mxu0 (!%p412_p10), %vm1384_vm9, %v1383_v10  ;;  %v1112_v38 = vld [vmem:[%s1699_s4 + $0x8] sm:$0xf] (!%p412_p10)  ;;  %v1110_v39 = vld [vmem:[%s1699_s4 + $0x4] sm:$0xf] (!%p412_p10) }
  0x1b   : > { %v541_v3 = vadd.s32 (!%p412_p10), 128, %v540_v2  ;;  %v542_v4 = vadd.s32 (!%p412_p10), 256, %v540_v2  ;;  %s1107_s28 = sadd.s32 (!%p412_p10), 4294967168, %s1106_s25  ;;  %p503_p1 = scmp.lt.s32.totalorder (!%p412_p10), %s1364_s16, 2  ;;  %v568_v11 = vsub.s32 (!%p412_p10), 0, %v1523_v6  ;;  %v572_v12 = vsub.s32 (!%p412_p10), 4, %v1523_v6 }
  0x1c   : > { %v543_v5 = vstv (!%p412_p10), %s1107_s28  ;;  %s1708_s24 = sadd.s32 (!%p412_p10), 1, %s1364_s16  ;;  %s1719_s0 = sld [smem:[#allocation13_spill]] (!%p412_p10)  ;;  %v814_v44 = vld [vmem:[%s1703_s8] sm:$0xff] (!%p412_p10) }
  0x1d   : > { %v544_v7 = vadd.s32 (!%p412_p10), %v543_v5, %v540_v2  ;;  %v545_v8 = vadd.s32 (!%p412_p10), %v543_v5, %v541_v3  ;;  %v546_v9 = vadd.s32 (!%p412_p10), %v543_v5, %v542_v4  ;;  %p1539_p2 = scmp.lt.s32.totalorder (!%p412_p10), %s1708_s24, 2  ;;  %s1721_s11 = sadd.s32 (!%p412_p10), 1, %s1364_s16 }
  0x1e   : > { %s491_s21 = scalar_select %p490_p12, %s1368_s17, 1 }
  0x1f   : > { %s1737_s12 = smov (!%p488_p13, %s1093_s12), 0  ;;  %vm547_vm0 = vcmp.ge.s32.totalorder %v544_v7, 0  ;;  %vm548_vm1 = vcmp.ge.s32.totalorder %v545_v8, 0  ;;  %vm550_vm2 = vcmp.lt.s32.totalorder %v544_v7, 300  ;;  %vm551_vm3 = vcmp.lt.s32.totalorder %v545_v8, 300  ;;  %s1741_s11 = smov (!%p1539_p2, %s1721_s11), 2 }
  0x20   : > { %s1519_s22 = smul.u32 3, %s491_s21  ;;  %s1739_s12 = smov (!%p1094_p0, %s1737_s12), 2  ;;  %vm553_vm4 = vmand %vm547_vm0, %vm550_vm2  ;;  %vm549_vm5 = vcmp.ge.s32.totalorder %v546_v9, 0  ;;  %vm552_vm6 = vcmp.lt.s32.totalorder %v546_v9, 300  ;;  %vm599_vm2 = vcmask 1041408  }
  0x21   : > { %vm554_vm7 = vmand %vm548_vm1, %vm551_vm3  ;;  %s1743_s11 = smov (!%p1539_p2, %s1741_s11), 2  ;;  %s1386_s19 = smov 126   ;;  %vm593_vm1 = vcmask 15360   ;;  %vm747_vm3 = vcmask 1031168   ;;  %v812_v8 = vld [vmem:[%s1702_s7] sm:$0xf] }
  0x22   : > { %s495_s29 = sadd.s32 %s1519_s22, %s1739_s12  ;;  %vm562_vm8 = vmpackc.low %vm554_vm7, %vm553_vm4  ;;  %vm595_vm4 = vcmask 31744   ;;  %v1387_v9 = vmov 1983009808   ;;  %s1164_s25 = smul.u32 3, %s1368_s17 }
  0x23   : > { %s1099_s30 = sshll.u32 %s495_s29, 1  ;;  %v564_v13 = vsel %vm562_vm8, 65537, %v1382_v1  ;;  %vm555_vm10 = vmand %vm549_vm5, %vm552_vm6 }
  0x24   : > { %s504_s12 = scalar_select %p503_p1, %s1364_s16, 2  ;;  %v569_v15 = vrot.slane %v564_v13, %v568_v11  ;;  %v573_v16 = vrot.slane %v564_v13, %v572_v12  ;;  %vm563_vm12 = vmpackc.low %vm555_vm10, %vm555_vm10 }
  0x25   : > { %s497_s28 = scalar_lea.vmem %s1719_s0, %s1099_s30  ;;  %v565_v18 = vsel %vm563_vm12, 65537, %v1382_v1  ;;  %s1385_s0 = smov 2  }
  0x26   : > { %s506_s23 = sadd.s32 %s1519_s22, %s504_s12  ;;  %v534_v14 = vld [vmem:[%s497_s28] sm:$0x3]  ;;  %vm578_vm13 = vcmp.ne.s16.totalorder %v569_v15, 0  ;;  %vm579_vm14 = vcmp.ne.s16.totalorder %v573_v16, 0  ;;  %v577_v20 = vrot.slane %v565_v18, %v568_v11  ;;  %s517_s28 = sadd.s32 %s1519_s22, %s1743_s11 }
  0x27   : > { %s1100_s21 = sshll.u32 %s506_s23, 1  ;;  %s1105_s30 = sshll.u32 %s506_s23, 2  ;;  %v581_v22 = vsel %vm578_vm13, %v534_v14, 0 }
  0x28   : > { %s508_s12 = scalar_lea.vmem %s1696_s1, %s1100_s21  ;;  %s530_s18 = scalar_lea.vmem %s1698_s3, %s1105_s30  ;;  %589 = vrot.lane.b32.xlu0 %v581_v22, %s1385_s0  ;;  %vm580_vm0 = vcmp.ne.s16.totalorder %v577_v20, 0 }
  0x29   : > { %v535_v17 = vld [vmem:[%s508_s12] sm:$0x3]  ;;  %s899_s11 = sadd.s32 %s1364_s16, %s1164_s25 }
  0x2a   : > { %v585_v19 = vld [vmem:[%s530_s18] sm:$0x7]  ;;  %v582_v23 = vsel %vm579_vm14, %v535_v17, 0  ;;  %s1104_s18 = sshll.u32 %s517_s28, 1  ;;  %s1117_s22 = sshll.u32 %s899_s11, 5 }
  0x2b   : > { %v649_v21 = vsel %vm647_vm11, %v585_v19, 0  ;;  %743 = vrot.lane.b32.xlu1 %v582_v23, %s1386_s19  ;;  %s519_s29 = scalar_lea.vmem %s1697_s2, %s1104_s18  ;;  %v697_v37 = vsel %vm599_vm2, %v582_v23, 0  ;;  %s1612_s16 = scalar_lea.hbm %s1704_s9, %s1117_s22 }
  0x2c   : > { %1140 = vmatpush3.bf16.msra.mxu1 %v649_v21  ;;  %591 = vrot.lane.b32.xlu0 %v582_v23, %s1385_s0  ;;  %v536_v25 = vld [vmem:[%s519_s29] sm:$0x3]  ;;  %s1603_s29 = sand.u32 1, %s1356_s14   ;;  %s1619_s30 = scalar_lea.hbm %s1705_s10, %s1117_s22 }
  0x2d   : > { %1151 = vmatprep.subr.bf16.mxu1 %v1383_v10  ;;  %v583_v26 = vsel %vm580_vm0, %v536_v25, 0  ;;  %s1091_s12 = sshll.u32 %s1603_s29, 1  ;;  %s883_s25 = scalar_lea.sflag [#allocation3], %s1603_s29 }
  0x2e   : > { %s479_s23 = scalar_lea.vmem [#allocation2], %s1091_s12  ;;  %s486_s17 = scalar_lea.vmem [#allocation4], %s1091_s12 }
  0x2f   : > { %1142 = vmatmul.mubr.msk.bf16.vlgmr.msra.gmra.mrb[0].mxu1 %vm643_vm15, %v584_v24  ;;  %745 = vrot.lane.b32.xlu1 %v583_v26, %s1386_s19  ;;  %s903_s24 = sshll.u32 %s479_s23, 4  ;;  %s918_s0 = sshll.u32 %s486_s17, 4  ;;  %s1614_s24 = int_to_ptr.vmem [resolvable:$true] %s903_s24  ;;  %s1621_s0 = int_to_ptr.vmem [resolvable:$true] %s918_s0 }
  0x30   : > { %1153 = vmatprep.mubr.msk.bf16.mxu1 %vm1384_vm9, %v1383_v10  ;;  %799 = vperm.xlu0 %1248, %v796_v27   ;;  %s1254_s12 = scalar_lea.vmem %s1614_s24, 32  ;;  %s1388_s11 = smov [#allocation2]  }
  0x31   : > { %p1255_p4 = scmp.ne.s32.totalorder %s1614_s24, %s1254_s12  ;;  %s1258_s19 = sshll.u32 %s1388_s11, 4  ;;  %s1259_s19 = int_to_ptr.vmem [resolvable:$false] %s1258_s19 }
  0x32   : > { %s1260_s28 = scalar_lea.vmem %s1259_s19, 64  ;;  %p1261_p7 = scmp.lt.s32.totalorder %s1614_s24, %s1259_s19 }
  0x33   : > { %817 = vperm.xlu1 %1249, %v814_v44   ;;  %p1256_p5 = pnand %p1255_p4, %p1496_p3  ;;  %p1262_p9 = scmp.lt.s32.totalorder %s1260_s28, %s1254_s12 }
  0x35   : > { %p1257_p6 = pneg %p1256_p5  ;;  %p1263_p10 = por %p1262_p9, %p1261_p7 }
  0x37   : > { %p1264_p11 = pnand %p1263_p10, %p1257_p6 }
  0x9a   : > { %v590_v28 = vpop.permute.xlu0 %589 }
  0x9d   : > { %v744_v29 = vpop.permute.xlu1 %743 }
  0x9e   : > { %v592_v30 = vpop.permute.xlu0 %591 }
  0x9f   : > { %v594_v31 = vsel %vm593_vm1, %v590_v28, %v592_v30 }
  0xa0   : > { %v601_v32 = vsel %vm599_vm2, %v594_v31, 0 }
  0xa1   : > { %v746_v33 = vpop.permute.xlu1 %745  ;;  %1134 = vmatpush3.bf16.msra.mxu0 %v601_v32 }
  0xa2   : > { %v748_v34 = vsel %vm747_vm3, %v744_v29, %v746_v33  ;;  %1145 = vmatprep.subr.bf16.mxu0 %v1383_v10 }
  0xa3   : > { %v753_v36 = vsel %vm599_vm2, %v748_v34, 0 }
  0xa4   : > { %1152 = vmatpush3.bf16.msra.mxu1 %v753_v36  ;;  %1136 = vmatmul.mubr.msk.bf16.vlgmr.msra.gmra.mrb[0].mxu0 %vm595_vm4, %v586_v35 }
  0xa5   : > { %1146 = vmatpush3.bf16.msra.mxu0 %v697_v37  ;;  %1147 = vmatprep.mubr.msk.bf16.mxu0 %vm1384_vm9, %v1383_v10 }
  0xa6   : > { %1157 = vmatprep.subr.bf16.mxu0 %v1383_v10 }
  0xa7   : > { %1154 = vmatmul.mubr.msk.bf16.vlgmr.msra.gmra.mrb[4].mxu1 %vm595_vm4, %v1112_v38 }
  0xac   : > { %1148 = vmatmul.mubr.msk.bf16.vlgmr.msra.gmra.mrb[4].mxu0 %vm595_vm4, %v1110_v39 }
  0xad   : > { %1159 = vmatprep.mubr.msk.bf16.mxu0 %vm1384_vm9, %v1383_v10  ;;  %v873_v10 = vunpack.c.l.s4 %v1387_v9 }
  0xaf   : > { %v800_v58 = vpop.permute.xlu0 %799  ;;  %v874_v11 = vunpack.c.0.s8 %v873_v10 }
  0xb1   : > { %v877_v15 = vsub.s32 %v874_v11, %v1523_v6 }
  0xb2   : > { %v818_v12 = vpop.permute.xlu1 %817 }
 0x102   : > { %v685_v40 = vpop.f32.mrb[0].mxu1 }
 0x103   : > { %v1143_v41 = vpop.f32.mrb[1].mxu1 }
 0x104   : > { %v688_v42 = vpop.f32.mrb[2].mxu1 }
 0x105   : > { %v1144_v43 = vpop.f32.mrb[3].mxu1 }
 0x177   : > { %v637_v45 = vpop.f32.mrb[0].mxu0 }
 0x178   : > { %v686_v46 = vadd.f32 %v685_v40, %v637_v45  ;;  %v1137_v47 = vpop.f32.mrb[1].mxu0 }
 0x179   : > { %v640_v48 = vpop.f32.mrb[2].mxu0 }
 0x17a   : > { %v789_v49 = vpop.f32.mrb[4].mxu1  ;;  %v1138_v50 = vpop.f32.mrb[3].mxu0 }
 0x17b   : > { %v1155_v51 = vpop.f32.mrb[5].mxu1 }
 0x17c   : > { %v792_v52 = vpop.f32.mrb[6].mxu1 }
 0x17d   : > { %v1156_v53 = vpop.f32.mrb[7].mxu1 }
 0x17f   : > { %v733_v54 = vpop.f32.mrb[4].mxu0 }
 0x180   : > { %v739_v55 = vadd.f32 %v733_v54, %v686_v46  ;;  %v1149_v56 = vpop.f32.mrb[5].mxu0 }
 0x181   : > { %v736_v57 = vpop.f32.mrb[6].mxu0 }
 0x182   : > { %v1150_v59 = vpop.f32.mrb[7].mxu0  ;;  %v795_v60 = vadd.f32 %v789_v49, %v739_v55 }
 0x184   : > { %v802_v61 = vadd.f32 %v800_v58, %v795_v60 }
 0x186   : > { %v803_v62 = vmul.f32 0.5, %v802_v61  ;;  %1250 = vtanh.f32 %v802_v61 }
 0x188   : > { %1252 = vtanh.f32 %v803_v62 }
 0x190   : > { %v1251_v63 = vpop.eup %1250 }
 0x191   : > { %v809_v3 = vrot.slane %v1251_v63, 4 }
 0x192   : > { %v1253_v0 = vpop.eup %1252 }
 0x193   : > { %v805_v1 = vadd.f32 1.0, %v1253_v0 }
 0x195   : > { %v806_v2 = vmul.f32 0.5, %v805_v1 }
 0x197   : > { %v811_v4 = vmul.f32 %v809_v3, %v806_v2 }
 0x199   : > { %v813_v5 = vpack.c.bf16 %v811_v4, %v811_v4 }
 0x19b   : > { %v824_v7 = vsel %vm599_vm2, %v813_v5, 0 }
 0x19c   : > { %1158 = vmatpush3.bf16.msra.mxu0 %v824_v7 }
 0x19f   : > { %1160 = vmatmul.mubr.msk.bf16.vlgmr.msra.gmra.mrb[8].mxu0 %vm595_vm4, %v812_v8 }
 0x272   : > { %v860_v13 = vpop.f32.mrb[8].mxu0 }
 0x273   : > { %v861_v14 = vadd.f32 %v860_v13, %v818_v12  ;;  %v1161_v16 = vpop.f32.mrb[9].mxu0 }
 0x274   : > { %v863_v17 = vpop.f32.mrb[10].mxu0 }
 0x275   : > { %v866_v18 = vadd.f32 %v861_v14, %v811_v4  ;;  %v870_v19 = vpack.c.bf16 %v861_v14, %v861_v14  ;;  %v1162_v20 = vpop.f32.mrb[11].mxu0 }
 0x277   : > { %v867_v21 = vmul.f32 0.70710677, %v866_v18  ;;  %v878_v22 = vrot.slane %v870_v19, %v877_v15 }
 0x279   : > { %v868_v6 = vpack.c.bf16 %v867_v21, %v867_v21  ;;  %v879_v23 = vcombine.high %v878_v22, %v878_v22 }
 0x27b   : > { %869 = vst [vmem:[%s479_s23] sm:$0x3] %v868_v6  ;;  %881 = vst [vmem:[%s486_s17] sm:$0x3] %v879_v23 }
 0x27c   : > { %1267 = shalt.err (!%p1264_p11)
}
 0x27d   : > { %s1268_s22 = scalar_lea.hbm %s1612_s16, 32  ;;  %s1272_s18 = scalar_lea.hbm %s1704_s9, 192 }
 0x27e   : > { %p1269_p12 = scmp.ne.s32.totalorder %s1612_s16, %s1268_s22  ;;  %p1273_p1 = scmp.lt.u32.totalorder %s1612_s16, %s1704_s9 }
 0x27f   : > { %p1274_p2 = scmp.lt.u32.totalorder %s1272_s18, %s1268_s22  ;;  %p1276_p5 = scmp.lt.u32.totalorder %s1268_s22, %s1612_s16 }
 0x280   : > { %p1270_p13 = pnand %p1269_p12, %p1496_p3 }
 0x281   : > { %p1275_p4 = por %p1274_p2, %p1273_p1 }
 0x282   : > { %p1271_p0 = pneg %p1270_p13 }
 0x283   : > { %p1277_p6 = por %p1276_p5, %p1275_p4 }
 0x285   : > { %p1278_p7 = pnand %p1277_p6, %p1271_p0 }
 0x287   : > { %1281 = shalt.err (!%p1278_p7)
}
 0x288   : > { %1166 = dma.vmem_to_hbm [thread:$0]  (%p1496_p3), %s1614_s24, 32, %s1612_s16, %s883_s25  }
 0x289   : > { %s888_s12 = scalar_lea.sflag [#allocation5], %s1603_s29  ;;  %s1282_s19 = scalar_lea.vmem %s1621_s0, 32 }
 0x28a   : > { %p1283_p9 = scmp.ne.s32.totalorder %s1621_s0, %s1282_s19  ;;  %s1389_s28 = smov [#allocation4]  }
 0x28b   : > { %s1286_s22 = sshll.u32 %s1389_s28, 4  ;;  %s1287_s22 = int_to_ptr.vmem [resolvable:$false] %s1286_s22 }
 0x28c   : > { %p1284_p10 = pnand %p1283_p9, %p1496_p3  ;;  %s1288_s23 = scalar_lea.vmem %s1287_s22, 64 }
 0x28d   : > { %p1289_p12 = scmp.lt.s32.totalorder %s1621_s0, %s1287_s22  ;;  %p1290_p13 = scmp.lt.s32.totalorder %s1288_s23, %s1282_s19 }
 0x28e   : > { %p1285_p11 = pneg %p1284_p10 }
 0x28f   : > { %p1291_p0 = por %p1290_p13, %p1289_p12 }
 0x291   : > { %p1292_p1 = pnand %p1291_p0, %p1285_p11 }
 0x293   : > { %1295 = shalt.err (!%p1292_p1)
}
 0x294   : > { %s1296_s29 = scalar_lea.hbm %s1619_s30, 32  ;;  %s1300_s25 = scalar_lea.hbm %s1705_s10, 192 }
 0x295   : > { %p1297_p2 = scmp.ne.s32.totalorder %s1619_s30, %s1296_s29  ;;  %p1301_p6 = scmp.lt.u32.totalorder %s1619_s30, %s1705_s10 }
 0x296   : > { %p1302_p7 = scmp.lt.u32.totalorder %s1300_s25, %s1296_s29  ;;  %p1304_p10 = scmp.lt.u32.totalorder %s1296_s29, %s1619_s30 }
 0x297   : > { %p1298_p4 = pnand %p1297_p2, %p1496_p3 }
 0x298   : > { %p1303_p9 = por %p1302_p7, %p1301_p6 }
 0x299   : > { %p1299_p5 = pneg %p1298_p4 }
 0x29a   : > { %p1305_p11 = por %p1304_p10, %p1303_p9 }
 0x29c   : > { %p1306_p12 = pnand %p1305_p11, %p1299_p5 }
 0x29e   : > { %1309 = shalt.err (!%p1306_p12)
}
 0x29f   : > { %1167 = dma.vmem_to_hbm [thread:$0]  (%p1496_p3), %s1621_s0, 32, %s1619_s30, %s888_s12  }
 0x2a0 PF: > { %p1177_p13 = scmp.ge.s32.totalorder %s1380_s20, 2  ;;  %s930_s21 = sand.u32 1, %s1352_s13  }
 0x2a1   : > { %s931_s11 = scalar_lea.sflag [#allocation3], %s930_s21 }
 0x2a2   : > { %p1171_p0 = pnand %p1177_p13, %p1505_p8 }
 0x2a4   : > { %1343 = dma.done.wait (!%p1171_p0), %s931_s11, 32  }
 0x2a5   : > { %1345 = vsyncadd (!%p1171_p0), %s931_s11, 4294967264  ;;  %s940_s19 = scalar_lea.sflag [#allocation5], %s930_s21 }
 0x2a6   : > { %1347 = dma.done.wait (!%p1171_p0), %s940_s19, 32  }
 0x2a7   : > { %1349 = vsyncadd (!%p1171_p0), %s940_s19, 4294967264  ;;  %s27_s20 = sadd.s32 1, %s1380_s20   ;;  %s1722_s26 = sld [smem:[#allocation12_spill]] }
 0x2a8   : > { %p24_p1 = scmp.ge.s32.totalorder %s27_s20, 8   ;;  %s1723_s16 = sld [smem:[#allocation8_spill]] }
 0x2a9   : > { %s1724_s17 = sld [smem:[#allocation9_spill]]  ;;  %s1725_s18 = sld [smem:[#allocation10_spill]] }
 0x2aa   : > { %s1726_s19 = sld [smem:[#allocation11_spill]]  ;;  %s1727_s13 = smov %s1356_s14 }
 0x2ab   : > { %s1728_s14 = smov %s1360_s15  ;;  %26 = sbr.rel (!%p24_p1) target bundleno = 9 (0x9), region = 119 }
 0x2ad   : > { %s1729_s15 = smov %s1722_s26 }
 0x2b2   :  { %945 = vsyncpa [#allocation3], 1 }
 0x2b3   :  { %947 = vsyncpa [#allocation3 + $0x1], 1 }
 0x2b4   :  { %948 = vsyncpa [#allocation5], 1 }
 0x2b5   :  { %950 = vsyncpa [#allocation5 + $0x1], 1 }

</bundles_post_ra>
